<compile_context>
chip_gen: v7x
topology: tpu7x:2x2x1
jax: 0.10.0
libtpu: 0.0.40
codegen_flags: <defaults>
</compile_context>

<pallas_src>
import functools

import jax
import jax.numpy as jnp
from jax import lax
from jax.experimental import pallas as pl
from jax.experimental.pallas import tpu as pltpu

NUM_WAYPOINT = 30
INPUT_SIZE = NUM_WAYPOINT * 2 + 1      # 61
HIDDEN = 32
NUM_ACTIONS = 4                        # standard_action_dim=True -> a, b, c, d
OUT_WIDTH = 3 * NUM_ACTIONS            # 12 output rows: [mu(4) | sigma(4) | action(4)]
LANES = 128
MAX_BATCH_BLOCK = 2048                 # batch-block (lane axis), multiple of 128

# NT dimension numbers: contract last dim of lhs with last dim of rhs.
NT_DIM_NUMBERS = (((1,), (1,)), ((), ()))


def _round_up(n, m):
    return ((n + m - 1) // m) * m


def _softplus(x):
    # numerically stable softplus (matches F.softplus semantics)
    return jnp.maximum(x, 0.0) + jnp.log1p(jnp.exp(-jnp.abs(x)))


def ar_kernel(x_ref, w_in_ref, b_in_ref, w_heads_ref, b_heads_ref, eps_ref,
              we_ref, out_ref, *, deterministic: bool):
    # Hoist the 12 autoregressive SMEM scalars off the serial VPU/EUP chain.
    we = [we_ref[i] for i in range(12)]

    # fc_input, batch-in-lanes: contract the shared 61-dim of w_in^T [32, 61]
    # with the natural-layout x tile [BB, 61]  ->  s [32, BB]  (NT matmul,
    # no wrapper-side transpose/copy of x needed).  Bias folded via broadcast.
    s = lax.dot_general(w_in_ref[...], x_ref[...], NT_DIM_NUMBERS,
                        preferred_element_type=jnp.float32)
    s = jnp.maximum(s + b_in_ref[...], 0.0)                       # [32, BB]

    # One fused MXU matmul for all four heads' base pre-activations: [8, BB]
    # rows 0..3 = mu pre-acts (a..d), rows 4..7 = sigma pre-acts (a..d).
    h = jnp.dot(w_heads_ref[...], s, preferred_element_type=jnp.float32)
    h = h + b_heads_ref[...]                                       # [8, BB]

    eps = eps_ref[...]                                             # [4, BB]

    # ---- head a ----
    mu_a = h[0:1, :]
    sig_a = _softplus(h[4:5, :])
    act_a = mu_a + sig_a * eps[0:1, :]
    prev_a = mu_a if deterministic else act_a

    # ---- head b ----  (prev-action contribution = scalar FMA, no MXU)
    mu_b = h[1:2, :] + prev_a * we[0]
    sig_b = _softplus(h[5:6, :] + prev_a * we[1])
    act_b = mu_b + sig_b * eps[1:2, :]
    prev_b = mu_b if deterministic else act_b

    # ---- head c ----
    mu_c = h[2:3, :] + prev_a * we[2] + prev_b * we[4]
    sig_c = _softplus(h[6:7, :] + prev_a * we[3] + prev_b * we[5])
    act_c = mu_c + sig_c * eps[2:3, :]
    prev_c = mu_c if deterministic else act_c

    # ---- head d ----
    mu_d = h[3:4, :] + prev_a * we[6] + prev_b * we[8] + prev_c * we[10]
    sig_d = _softplus(h[7:8, :] + prev_a * we[7] + prev_b * we[9] + prev_c * we[11])
    act_d = mu_d + sig_d * eps[3:4, :]

    # Lane-dense [12, BB] output block; direct sub-row stores (no concatenates).
    out_ref[0:1, :] = mu_a
    out_ref[1:2, :] = mu_b
    out_ref[2:3, :] = mu_c
    out_ref[3:4, :] = mu_d
    out_ref[4:5, :] = sig_a
    out_ref[5:6, :] = sig_b
    out_ref[6:7, :] = sig_c
    out_ref[7:8, :] = sig_d
    out_ref[8:9, :] = act_a
    out_ref[9:10, :] = act_b
    out_ref[10:11, :] = act_c
    out_ref[11:12, :] = act_d


def init_params(key):
    """Deterministic init mimicking nn.Linear (uniform +/- 1/sqrt(fan_in))."""
    def linear(k, fan_in, fan_out):
        k_w, k_b = jax.random.split(k)
        bound = 1.0 / float(fan_in) ** 0.5
        w = jax.random.uniform(k_w, (fan_in, fan_out), jnp.float32, -bound, bound)
        b = jax.random.uniform(k_b, (1, fan_out), jnp.float32, -bound, bound)
        return w, b

    k0, k1, k2, k3, k4 = jax.random.split(key, 5)
    w_in, b_in = linear(k0, INPUT_SIZE, HIDDEN)
    w_a, b_a = linear(k1, HIDDEN, 2)
    w_b, b_b = linear(k2, HIDDEN + 1, 2)
    w_c, b_c = linear(k3, HIDDEN + 2, 2)
    w_d, b_d = linear(k4, HIDDEN + 3, 2)
    # split concatenated-input heads into the s-part and the extra (prev-action) part
    return dict(
        w_in=w_in, b_in=b_in,
        w_a=w_a, b_a=b_a,
        w_b_s=w_b[:HIDDEN], w_b_e=w_b[HIDDEN:], b_b=b_b,
        w_c_s=w_c[:HIDDEN], w_c_e=w_c[HIDDEN:], b_c=b_c,
        w_d_s=w_d[:HIDDEN], w_d_e=w_d[HIDDEN:], b_d=b_d,
    )


def pack_params(params):
    """Pack the 13 small tensors into 5 kernel inputs (4 VMEM matrices + 1 SMEM vec)."""
    w_in_t = params["w_in"].T.astype(jnp.float32)                  # [32, 61]
    b_in_col = params["b_in"].reshape(HIDDEN, 1).astype(jnp.float32)  # [32, 1]

    # Fused head s-weights (transposed) + biases.
    # rows 0..3 = mu weights (a..d), rows 4..7 = sigma weights (a..d).
    w_heads_t = jnp.zeros((2 * NUM_ACTIONS, HIDDEN), jnp.float32)
    b_heads = jnp.zeros((2 * NUM_ACTIONS, 1), jnp.float32)

    def put(wh, bh, row, w, b):
        wh = wh.at[row, :].set(w[:, 0])
        wh = wh.at[row + NUM_ACTIONS, :].set(w[:, 1])
        bh = bh.at[row, 0].set(b[0, 0])
        bh = bh.at[row + NUM_ACTIONS, 0].set(b[0, 1])
        return wh, bh

    w_heads_t, b_heads = put(w_heads_t, b_heads, 0, params["w_a"], params["b_a"])
    w_heads_t, b_heads = put(w_heads_t, b_heads, 1, params["w_b_s"], params["b_b"])
    w_heads_t, b_heads = put(w_heads_t, b_heads, 2, params["w_c_s"], params["b_c"])
    w_heads_t, b_heads = put(w_heads_t, b_heads, 3, params["w_d_s"], params["b_d"])

    # Tiny autoregressive prev-action weights -> 12 SMEM scalars.
    # layout: [b_e(mu,sig) | c_e row0(mu,sig), row1(mu,sig) | d_e row0..2 (mu,sig)]
    we = jnp.concatenate([
        params["w_b_e"].reshape(-1),   # 2
        params["w_c_e"].reshape(-1),   # 4
        params["w_d_e"].reshape(-1),   # 6
    ]).astype(jnp.float32)             # (12,)

    return dict(w_in_t=w_in_t, b_in=b_in_col, w_heads_t=w_heads_t,
                b_heads=b_heads, we=we)


def autoregressive_forward(x, packed, eps, deterministic: bool):
    B = x.shape[0]
    bb = min(_round_up(max(B, 1), LANES), MAX_BATCH_BLOCK)   # lane-axis batch block
    b_pad = _round_up(B, bb)
    pad = b_pad - B

    # x stays in its natural [B, 61] layout (read exactly once by the kernel);
    # only the tiny eps (16 B/sample) is transposed in the wrapper.
    x_p = jnp.pad(x.astype(jnp.float32), ((0, pad), (0, 0)))          # [b_pad, 61]
    eps_t = jnp.pad(eps.astype(jnp.float32).T, ((0, 0), (0, pad)))    # [4, b_pad]

    kernel = functools.partial(ar_kernel, deterministic=deterministic)
    vmem = pltpu.MemorySpace.VMEM
    smem = pltpu.MemorySpace.SMEM

    out = pl.pallas_call(
        kernel,
        out_shape=jax.ShapeDtypeStruct((OUT_WIDTH, b_pad), jnp.float32),
        grid=(b_pad // bb,),
        in_specs=[
            pl.BlockSpec((bb, INPUT_SIZE), lambda i: (i, 0), memory_space=vmem),
            pl.BlockSpec((HIDDEN, INPUT_SIZE), lambda i: (0, 0), memory_space=vmem),
            pl.BlockSpec((HIDDEN, 1), lambda i: (0, 0), memory_space=vmem),
            pl.BlockSpec((2 * NUM_ACTIONS, HIDDEN), lambda i: (0, 0),
                         memory_space=vmem),
            pl.BlockSpec((2 * NUM_ACTIONS, 1), lambda i: (0, 0), memory_space=vmem),
            pl.BlockSpec((NUM_ACTIONS, bb), lambda i: (0, i), memory_space=vmem),
            pl.BlockSpec(memory_space=smem),          # 12 autoregressive scalars
        ],
        out_specs=pl.BlockSpec((OUT_WIDTH, bb), lambda i: (0, i), memory_space=vmem),
        compiler_params=pltpu.CompilerParams(dimension_semantics=("parallel",)),
    )(x_p, packed["w_in_t"], packed["b_in"], packed["w_heads_t"],
      packed["b_heads"], eps_t, packed["we"])

    mu = out[0:NUM_ACTIONS, :B].T
    sigma = out[NUM_ACTIONS:2 * NUM_ACTIONS, :B].T
    action = out[2 * NUM_ACTIONS:3 * NUM_ACTIONS, :B].T
    return mu, sigma, action


def reference_forward(x, params, eps, deterministic: bool):
    """Pure-JAX reference with identical math (mirrors the PyTorch forward)."""
    s = jnp.maximum(x @ params["w_in"] + params["b_in"], 0.0)

    def head(w_s, w_e, b, prev, col):
        h = s @ w_s + b
        if prev is not None:
            h = h + prev @ w_e
        mu = h[:, 0:1]
        sigma = _softplus(h[:, 1:2])
        action = mu + sigma * eps[:, col:col + 1]
        return mu, sigma, action

    mu_a, sg_a, ac_a = head(params["w_a"], None, params["b_a"], None, 0)
    ctx = mu_a if deterministic else ac_a
    mu_b, sg_b, ac_b = head(params["w_b_s"], params["w_b_e"], params["b_b"], ctx, 1)
    ctx = (jnp.concatenate([mu_a, mu_b], 1) if deterministic
           else jnp.concatenate([ac_a, ac_b], 1))
    mu_c, sg_c, ac_c = head(params["w_c_s"], params["w_c_e"], params["b_c"], ctx, 2)
    ctx = (jnp.concatenate([mu_a, mu_b, mu_c], 1) if deterministic
           else jnp.concatenate([ac_a, ac_b, ac_c], 1))
    mu_d, sg_d, ac_d = head(params["w_d_s"], params["w_d_e"], params["b_d"], ctx, 3)
    mu = jnp.concatenate([mu_a, mu_b, mu_c, mu_d], 1)
    sigma = jnp.concatenate([sg_a, sg_b, sg_c, sg_d], 1)
    action = jnp.concatenate([ac_a, ac_b, ac_c, ac_d], 1)
    return mu, sigma, action


if __name__ == "__main__":
    key = jax.random.PRNGKey(0)
    k_params, k_x, k_eps = jax.random.split(key, 3)

    params = init_params(k_params)
    packed = pack_params(params)

    B = 2
    x = jax.random.normal(k_x, (B, INPUT_SIZE), jnp.float32)
    eps = jax.random.normal(k_eps, (B, NUM_ACTIONS), jnp.float32)

    # stochastic branch
    mu, sigma, action = autoregressive_forward(x, packed, eps, deterministic=False)
    jax.block_until_ready((mu, sigma, action))
    mu_r, sigma_r, action_r = reference_forward(x, params, eps, deterministic=False)
    assert jnp.allclose(mu, mu_r, atol=1e-5), "mu mismatch"
    assert jnp.allclose(sigma, sigma_r, atol=1e-5), "sigma mismatch"
    assert jnp.allclose(action, action_r, atol=1e-5), "action mismatch"

    # deterministic branch
    mu_d, sigma_d, action_d = autoregressive_forward(x, packed, eps, deterministic=True)
    jax.block_until_ready((mu_d, sigma_d, action_d))
    mu_dr, sigma_dr, action_dr = reference_forward(x, params, eps, deterministic=True)
    assert jnp.allclose(mu_d, mu_dr, atol=1e-5), "mu (det) mismatch"
    assert jnp.allclose(sigma_d, sigma_dr, atol=1e-5), "sigma (det) mismatch"
    assert jnp.allclose(action_d, action_dr, atol=1e-5), "action (det) mismatch"

    print("KERNEL_OK")
</pallas_src>

<mosaic_0001>
module attributes {stable_mosaic.version = 11 : i64} {
  func.func @ar_kernel(%arg0: i32, %arg1: memref<128x61xf32, #tpu.memory_space<vmem>>, %arg2: memref<32x61xf32, #tpu.memory_space<vmem>>, %arg3: memref<32x1xf32, #tpu.memory_space<vmem>>, %arg4: memref<8x32xf32, #tpu.memory_space<vmem>>, %arg5: memref<8x1xf32, #tpu.memory_space<vmem>>, %arg6: memref<4x128xf32, #tpu.memory_space<vmem>>, %arg7: memref<12xf32, #tpu.memory_space<smem>>, %arg8: memref<12x128xf32, #tpu.memory_space<vmem>>) attributes {dimension_semantics = [#tpu.dimension_semantics<parallel>], iteration_bounds = array<i64: 1>, scalar_prefetch = 0 : i64, scratch_operands = 0 : i64, tpu.core_type = #tpu.core_type<tc>, window_params = [{transform_indices = @transform_0, window_bounds = array<i64: 128, 61>}, {pipeline_mode = #tpu.pipeline_mode<synchronous>, transform_indices = @transform_1, window_bounds = array<i64: 32, 61>}, {pipeline_mode = #tpu.pipeline_mode<synchronous>, transform_indices = @transform_2, window_bounds = array<i64: 32, 1>}, {pipeline_mode = #tpu.pipeline_mode<synchronous>, transform_indices = @transform_3, window_bounds = array<i64: 8, 32>}, {pipeline_mode = #tpu.pipeline_mode<synchronous>, transform_indices = @transform_4, window_bounds = array<i64: 8, 1>}, {transform_indices = @transform_5, window_bounds = array<i64: 4, 128>}, {transform_indices = @transform_6, window_bounds = array<i64: 12>}, {transform_indices = @transform_7, window_bounds = array<i64: 12, 128>}]} {
    %c0 = arith.constant 0 : index
    %0 = memref.load %arg7[%c0] : memref<12xf32, #tpu.memory_space<smem>>
    %c1 = arith.constant 1 : index
    %1 = memref.load %arg7[%c1] : memref<12xf32, #tpu.memory_space<smem>>
    %c2 = arith.constant 2 : index
    %2 = memref.load %arg7[%c2] : memref<12xf32, #tpu.memory_space<smem>>
    %c3 = arith.constant 3 : index
    %3 = memref.load %arg7[%c3] : memref<12xf32, #tpu.memory_space<smem>>
    %c4 = arith.constant 4 : index
    %4 = memref.load %arg7[%c4] : memref<12xf32, #tpu.memory_space<smem>>
    %c5 = arith.constant 5 : index
    %5 = memref.load %arg7[%c5] : memref<12xf32, #tpu.memory_space<smem>>
    %c6 = arith.constant 6 : index
    %6 = memref.load %arg7[%c6] : memref<12xf32, #tpu.memory_space<smem>>
    %c7 = arith.constant 7 : index
    %7 = memref.load %arg7[%c7] : memref<12xf32, #tpu.memory_space<smem>>
    %c8 = arith.constant 8 : index
    %8 = memref.load %arg7[%c8] : memref<12xf32, #tpu.memory_space<smem>>
    %c9 = arith.constant 9 : index
    %9 = memref.load %arg7[%c9] : memref<12xf32, #tpu.memory_space<smem>>
    %c10 = arith.constant 10 : index
    %10 = memref.load %arg7[%c10] : memref<12xf32, #tpu.memory_space<smem>>
    %c11 = arith.constant 11 : index
    %11 = memref.load %arg7[%c11] : memref<12xf32, #tpu.memory_space<smem>>
    %c0_0 = arith.constant 0 : index
    %c0_1 = arith.constant 0 : index
    %12 = vector.load %arg2[%c0_0, %c0_1] : memref<32x61xf32, #tpu.memory_space<vmem>>, vector<32x61xf32>
    %c0_2 = arith.constant 0 : index
    %c0_3 = arith.constant 0 : index
    %13 = vector.load %arg1[%c0_2, %c0_3] : memref<128x61xf32, #tpu.memory_space<vmem>>, vector<128x61xf32>
    %cst = arith.constant dense<0.000000e+00> : vector<32x128xf32>
    %14 = tpu.matmul %12, %13, %cst {dimension_numbers = #tpu.dot_dimension_numbers<[1], [1], [0], [0], [0, 0, 1, 0], [], []>} : vector<32x61xf32>, vector<128x61xf32>, vector<32x128xf32> -> vector<32x128xf32>
    %c0_4 = arith.constant 0 : index
    %c0_5 = arith.constant 0 : index
    %15 = vector.load %arg3[%c0_4, %c0_5] : memref<32x1xf32, #tpu.memory_space<vmem>>, vector<32x1xf32>
    %16 = vector.broadcast %15 : vector<32x1xf32> to vector<32x128xf32>
    %17 = arith.addf %14, %16 : vector<32x128xf32>
    %cst_6 = arith.constant 0.000000e+00 : f32
    %18 = vector.broadcast %cst_6 : f32 to vector<32x128xf32>
    %19 = arith.maximumf %17, %18 : vector<32x128xf32>
    %c0_7 = arith.constant 0 : index
    %c0_8 = arith.constant 0 : index
    %20 = vector.load %arg4[%c0_7, %c0_8] : memref<8x32xf32, #tpu.memory_space<vmem>>, vector<8x32xf32>
    %cst_9 = arith.constant dense<0.000000e+00> : vector<8x128xf32>
    %21 = tpu.matmul %20, %19, %cst_9 {dimension_numbers = #tpu.dot_dimension_numbers<[1], [0], [0], [1], [0, 0, 1, 1], [], []>} : vector<8x32xf32>, vector<32x128xf32>, vector<8x128xf32> -> vector<8x128xf32>
    %c0_10 = arith.constant 0 : index
    %c0_11 = arith.constant 0 : index
    %22 = vector.load %arg5[%c0_10, %c0_11] : memref<8x1xf32, #tpu.memory_space<vmem>>, vector<8x1xf32>
    %23 = vector.broadcast %22 : vector<8x1xf32> to vector<8x128xf32>
    %24 = arith.addf %21, %23 : vector<8x128xf32>
    %c0_12 = arith.constant 0 : index
    %c0_13 = arith.constant 0 : index
    %25 = vector.load %arg6[%c0_12, %c0_13] : memref<4x128xf32, #tpu.memory_space<vmem>>, vector<4x128xf32>
    %26 = vector.extract_strided_slice %24 {offsets = [0, 0], sizes = [1, 128], strides = [1, 1]} : vector<8x128xf32> to vector<1x128xf32>
    %27 = vector.extract_strided_slice %24 {offsets = [4, 0], sizes = [1, 128], strides = [1, 1]} : vector<8x128xf32> to vector<1x128xf32>
    %cst_14 = arith.constant 0.000000e+00 : f32
    %28 = vector.broadcast %cst_14 : f32 to vector<1x128xf32>
    %29 = arith.maximumf %27, %28 : vector<1x128xf32>
    %30 = math.absf %27 : vector<1x128xf32>
    %cst_15 = arith.constant 0.000000e+00 : f32
    %31 = vector.broadcast %cst_15 : f32 to vector<1x128xf32>
    %32 = arith.subf %31, %30 : vector<1x128xf32>
    %33 = math.exp %32 : vector<1x128xf32>
    %34 = math.log1p %33 : vector<1x128xf32>
    %35 = arith.addf %29, %34 : vector<1x128xf32>
    %36 = vector.extract_strided_slice %25 {offsets = [0, 0], sizes = [1, 128], strides = [1, 1]} : vector<4x128xf32> to vector<1x128xf32>
    %37 = arith.mulf %35, %36 : vector<1x128xf32>
    %38 = arith.addf %26, %37 : vector<1x128xf32>
    %39 = vector.extract_strided_slice %24 {offsets = [1, 0], sizes = [1, 128], strides = [1, 1]} : vector<8x128xf32> to vector<1x128xf32>
    %40 = vector.broadcast %0 : f32 to vector<1x128xf32>
    %41 = arith.mulf %38, %40 : vector<1x128xf32>
    %42 = arith.addf %39, %41 : vector<1x128xf32>
    %43 = vector.extract_strided_slice %24 {offsets = [5, 0], sizes = [1, 128], strides = [1, 1]} : vector<8x128xf32> to vector<1x128xf32>
    %44 = vector.broadcast %1 : f32 to vector<1x128xf32>
    %45 = arith.mulf %38, %44 : vector<1x128xf32>
    %46 = arith.addf %43, %45 : vector<1x128xf32>
    %cst_16 = arith.constant 0.000000e+00 : f32
    %47 = vector.broadcast %cst_16 : f32 to vector<1x128xf32>
    %48 = arith.maximumf %46, %47 : vector<1x128xf32>
    %49 = math.absf %46 : vector<1x128xf32>
    %cst_17 = arith.constant 0.000000e+00 : f32
    %50 = vector.broadcast %cst_17 : f32 to vector<1x128xf32>
    %51 = arith.subf %50, %49 : vector<1x128xf32>
    %52 = math.exp %51 : vector<1x128xf32>
    %53 = math.log1p %52 : vector<1x128xf32>
    %54 = arith.addf %48, %53 : vector<1x128xf32>
    %55 = vector.extract_strided_slice %25 {offsets = [1, 0], sizes = [1, 128], strides = [1, 1]} : vector<4x128xf32> to vector<1x128xf32>
    %56 = arith.mulf %54, %55 : vector<1x128xf32>
    %57 = arith.addf %42, %56 : vector<1x128xf32>
    %58 = vector.extract_strided_slice %24 {offsets = [2, 0], sizes = [1, 128], strides = [1, 1]} : vector<8x128xf32> to vector<1x128xf32>
    %59 = vector.broadcast %2 : f32 to vector<1x128xf32>
    %60 = arith.mulf %38, %59 : vector<1x128xf32>
    %61 = arith.addf %58, %60 : vector<1x128xf32>
    %62 = vector.broadcast %4 : f32 to vector<1x128xf32>
    %63 = arith.mulf %57, %62 : vector<1x128xf32>
    %64 = arith.addf %61, %63 : vector<1x128xf32>
    %65 = vector.extract_strided_slice %24 {offsets = [6, 0], sizes = [1, 128], strides = [1, 1]} : vector<8x128xf32> to vector<1x128xf32>
    %66 = vector.broadcast %3 : f32 to vector<1x128xf32>
    %67 = arith.mulf %38, %66 : vector<1x128xf32>
    %68 = arith.addf %65, %67 : vector<1x128xf32>
    %69 = vector.broadcast %5 : f32 to vector<1x128xf32>
    %70 = arith.mulf %57, %69 : vector<1x128xf32>
    %71 = arith.addf %68, %70 : vector<1x128xf32>
    %cst_18 = arith.constant 0.000000e+00 : f32
    %72 = vector.broadcast %cst_18 : f32 to vector<1x128xf32>
    %73 = arith.maximumf %71, %72 : vector<1x128xf32>
    %74 = math.absf %71 : vector<1x128xf32>
    %cst_19 = arith.constant 0.000000e+00 : f32
    %75 = vector.broadcast %cst_19 : f32 to vector<1x128xf32>
    %76 = arith.subf %75, %74 : vector<1x128xf32>
    %77 = math.exp %76 : vector<1x128xf32>
    %78 = math.log1p %77 : vector<1x128xf32>
    %79 = arith.addf %73, %78 : vector<1x128xf32>
    %80 = vector.extract_strided_slice %25 {offsets = [2, 0], sizes = [1, 128], strides = [1, 1]} : vector<4x128xf32> to vector<1x128xf32>
    %81 = arith.mulf %79, %80 : vector<1x128xf32>
    %82 = arith.addf %64, %81 : vector<1x128xf32>
    %83 = vector.extract_strided_slice %24 {offsets = [3, 0], sizes = [1, 128], strides = [1, 1]} : vector<8x128xf32> to vector<1x128xf32>
    %84 = vector.broadcast %6 : f32 to vector<1x128xf32>
    %85 = arith.mulf %38, %84 : vector<1x128xf32>
    %86 = arith.addf %83, %85 : vector<1x128xf32>
    %87 = vector.broadcast %8 : f32 to vector<1x128xf32>
    %88 = arith.mulf %57, %87 : vector<1x128xf32>
    %89 = arith.addf %86, %88 : vector<1x128xf32>
    %90 = vector.broadcast %10 : f32 to vector<1x128xf32>
    %91 = arith.mulf %82, %90 : vector<1x128xf32>
    %92 = arith.addf %89, %91 : vector<1x128xf32>
    %93 = vector.extract_strided_slice %24 {offsets = [7, 0], sizes = [1, 128], strides = [1, 1]} : vector<8x128xf32> to vector<1x128xf32>
    %94 = vector.broadcast %7 : f32 to vector<1x128xf32>
    %95 = arith.mulf %38, %94 : vector<1x128xf32>
    %96 = arith.addf %93, %95 : vector<1x128xf32>
    %97 = vector.broadcast %9 : f32 to vector<1x128xf32>
    %98 = arith.mulf %57, %97 : vector<1x128xf32>
    %99 = arith.addf %96, %98 : vector<1x128xf32>
    %100 = vector.broadcast %11 : f32 to vector<1x128xf32>
    %101 = arith.mulf %82, %100 : vector<1x128xf32>
    %102 = arith.addf %99, %101 : vector<1x128xf32>
    %cst_20 = arith.constant 0.000000e+00 : f32
    %103 = vector.broadcast %cst_20 : f32 to vector<1x128xf32>
    %104 = arith.maximumf %102, %103 : vector<1x128xf32>
    %105 = math.absf %102 : vector<1x128xf32>
    %cst_21 = arith.constant 0.000000e+00 : f32
    %106 = vector.broadcast %cst_21 : f32 to vector<1x128xf32>
    %107 = arith.subf %106, %105 : vector<1x128xf32>
    %108 = math.exp %107 : vector<1x128xf32>
    %109 = math.log1p %108 : vector<1x128xf32>
    %110 = arith.addf %104, %109 : vector<1x128xf32>
    %111 = vector.extract_strided_slice %25 {offsets = [3, 0], sizes = [1, 128], strides = [1, 1]} : vector<4x128xf32> to vector<1x128xf32>
    %112 = arith.mulf %110, %111 : vector<1x128xf32>
    %113 = arith.addf %92, %112 : vector<1x128xf32>
    %c0_22 = arith.constant 0 : index
    %c0_23 = arith.constant 0 : index
    %114 = vector.load %arg8[%c0_22, %c0_23] : memref<12x128xf32, #tpu.memory_space<vmem>>, vector<1x128xf32>
    tpu.vector_store %arg8[%c0_22, %c0_23], %26 {strides = array<i32>} : memref<12x128xf32, #tpu.memory_space<vmem>>, vector<1x128xf32>,
    %c1_24 = arith.constant 1 : index
    %c0_25 = arith.constant 0 : index
    %115 = vector.load %arg8[%c1_24, %c0_25] : memref<12x128xf32, #tpu.memory_space<vmem>>, vector<1x128xf32>
    tpu.vector_store %arg8[%c1_24, %c0_25], %42 {strides = array<i32>} : memref<12x128xf32, #tpu.memory_space<vmem>>, vector<1x128xf32>,
    %c2_26 = arith.constant 2 : index
    %c0_27 = arith.constant 0 : index
    %116 = vector.load %arg8[%c2_26, %c0_27] : memref<12x128xf32, #tpu.memory_space<vmem>>, vector<1x128xf32>
    tpu.vector_store %arg8[%c2_26, %c0_27], %64 {strides = array<i32>} : memref<12x128xf32, #tpu.memory_space<vmem>>, vector<1x128xf32>,
    %c3_28 = arith.constant 3 : index
    %c0_29 = arith.constant 0 : index
    %117 = vector.load %arg8[%c3_28, %c0_29] : memref<12x128xf32, #tpu.memory_space<vmem>>, vector<1x128xf32>
    tpu.vector_store %arg8[%c3_28, %c0_29], %92 {strides = array<i32>} : memref<12x128xf32, #tpu.memory_space<vmem>>, vector<1x128xf32>,
    %c4_30 = arith.constant 4 : index
    %c0_31 = arith.constant 0 : index
    %118 = vector.load %arg8[%c4_30, %c0_31] : memref<12x128xf32, #tpu.memory_space<vmem>>, vector<1x128xf32>
    tpu.vector_store %arg8[%c4_30, %c0_31], %35 {strides = array<i32>} : memref<12x128xf32, #tpu.memory_space<vmem>>, vector<1x128xf32>,
    %c5_32 = arith.constant 5 : index
    %c0_33 = arith.constant 0 : index
    %119 = vector.load %arg8[%c5_32, %c0_33] : memref<12x128xf32, #tpu.memory_space<vmem>>, vector<1x128xf32>
    tpu.vector_store %arg8[%c5_32, %c0_33], %54 {strides = array<i32>} : memref<12x128xf32, #tpu.memory_space<vmem>>, vector<1x128xf32>,
    %c6_34 = arith.constant 6 : index
    %c0_35 = arith.constant 0 : index
    %120 = vector.load %arg8[%c6_34, %c0_35] : memref<12x128xf32, #tpu.memory_space<vmem>>, vector<1x128xf32>
    tpu.vector_store %arg8[%c6_34, %c0_35], %79 {strides = array<i32>} : memref<12x128xf32, #tpu.memory_space<vmem>>, vector<1x128xf32>,
    %c7_36 = arith.constant 7 : index
    %c0_37 = arith.constant 0 : index
    %121 = vector.load %arg8[%c7_36, %c0_37] : memref<12x128xf32, #tpu.memory_space<vmem>>, vector<1x128xf32>
    tpu.vector_store %arg8[%c7_36, %c0_37], %110 {strides = array<i32>} : memref<12x128xf32, #tpu.memory_space<vmem>>, vector<1x128xf32>,
    %c8_38 = arith.constant 8 : index
    %c0_39 = arith.constant 0 : index
    %122 = vector.load %arg8[%c8_38, %c0_39] : memref<12x128xf32, #tpu.memory_space<vmem>>, vector<1x128xf32>
    tpu.vector_store %arg8[%c8_38, %c0_39], %38 {strides = array<i32>} : memref<12x128xf32, #tpu.memory_space<vmem>>, vector<1x128xf32>,
    %c9_40 = arith.constant 9 : index
    %c0_41 = arith.constant 0 : index
    %123 = vector.load %arg8[%c9_40, %c0_41] : memref<12x128xf32, #tpu.memory_space<vmem>>, vector<1x128xf32>
    tpu.vector_store %arg8[%c9_40, %c0_41], %57 {strides = array<i32>} : memref<12x128xf32, #tpu.memory_space<vmem>>, vector<1x128xf32>,
    %c10_42 = arith.constant 10 : index
    %c0_43 = arith.constant 0 : index
    %124 = vector.load %arg8[%c10_42, %c0_43] : memref<12x128xf32, #tpu.memory_space<vmem>>, vector<1x128xf32>
    tpu.vector_store %arg8[%c10_42, %c0_43], %82 {strides = array<i32>} : memref<12x128xf32, #tpu.memory_space<vmem>>, vector<1x128xf32>,
    %c11_44 = arith.constant 11 : index
    %c0_45 = arith.constant 0 : index
    %125 = vector.load %arg8[%c11_44, %c0_45] : memref<12x128xf32, #tpu.memory_space<vmem>>, vector<1x128xf32>
    tpu.vector_store %arg8[%c11_44, %c0_45], %113 {strides = array<i32>} : memref<12x128xf32, #tpu.memory_space<vmem>>, vector<1x128xf32>,
    return
  }
  func.func @transform_0(%arg0: i32) -> (i32, i32) {
    %c0_i32 = arith.constant 0 : i32
    %c0_i32_0 = arith.constant 0 : i32
    return %arg0, %c0_i32 : i32, i32
  }
  func.func @transform_1(%arg0: i32) -> (i32, i32) {
    %c0_i32 = arith.constant 0 : i32
    %c0_i32_0 = arith.constant 0 : i32
    %c0_i32_1 = arith.constant 0 : i32
    return %c0_i32, %c0_i32_0 : i32, i32
  }
  func.func @transform_2(%arg0: i32) -> (i32, i32) {
    %c0_i32 = arith.constant 0 : i32
    %c0_i32_0 = arith.constant 0 : i32
    %c0_i32_1 = arith.constant 0 : i32
    return %c0_i32, %c0_i32_0 : i32, i32
  }
  func.func @transform_3(%arg0: i32) -> (i32, i32) {
    %c0_i32 = arith.constant 0 : i32
    %c0_i32_0 = arith.constant 0 : i32
    %c0_i32_1 = arith.constant 0 : i32
    return %c0_i32, %c0_i32_0 : i32, i32
  }
  func.func @transform_4(%arg0: i32) -> (i32, i32) {
    %c0_i32 = arith.constant 0 : i32
    %c0_i32_0 = arith.constant 0 : i32
    %c0_i32_1 = arith.constant 0 : i32
    return %c0_i32, %c0_i32_0 : i32, i32
  }
  func.func @transform_5(%arg0: i32) -> (i32, i32) {
    %c0_i32 = arith.constant 0 : i32
    %c0_i32_0 = arith.constant 0 : i32
    return %c0_i32, %arg0 : i32, i32
  }
  func.func @transform_6(%arg0: i32) -> i32 {
    %c0_i32 = arith.constant 0 : i32
    %c0_i32_0 = arith.constant 0 : i32
    return %c0_i32 : i32
  }
  func.func @transform_7(%arg0: i32) -> (i32, i32) {
    %c0_i32 = arith.constant 0 : i32
    %c0_i32_0 = arith.constant 0 : i32
    return %c0_i32, %arg0 : i32, i32
  }
}

</mosaic_0001>

<bundles_post_ra>
// kernel: tpu_custom_call.1
= control target key start
LH: loop header
LB: loop body
LE: loop exit
PB: predicated region body
PF: predicated region fallthrough
CT: control target
= control target key end

     0   :  { %12 = vsyncpa [#allocation4], 0  ;;  %s928_s0 = inlined_call_operand.vmem [shape: f32[128,61], index: 0, kind: input, shape index: {}]   ;;  %s929_s1 = inlined_call_operand.vmem [shape: f32[32,61], index: 1, kind: input, shape index: {}]   ;;  %s930_s2 = inlined_call_operand.vmem [shape: f32[32,1], index: 2, kind: input, shape index: {}]   ;;  %s931_s3 = inlined_call_operand.vmem [shape: f32[8,32], index: 3, kind: input, shape index: {}]   ;;  %s932_s4 = inlined_call_operand.vmem [shape: f32[8,1], index: 4, kind: input, shape index: {}]   ;;  %s933_s5 = inlined_call_operand.vmem [shape: f32[4,128], index: 5, kind: input, shape index: {}]   ;;  %s934_s6 = inlined_call_operand.vmem [shape: f32[12], index: 6, kind: input, shape index: {}]   ;;  %s935_s7 = inlined_call_operand.hbm [shape: f32[12,128], index: 7, kind: output, shape index: {}]  }
   0x1   :  { %13 = vsyncpa [#allocation3], 0  ;;  %s32_s26 = sshll.u32 %s934_s6, 4  ;;  %s33_s26 = int_to_ptr.vmem [resolvable:$true] %s32_s26 }
   0x2   :  { %s698_s27 = scalar_lea.vmem %s33_s26, 16  ;;  %p703_p1 = scmp.lt.s32.totalorder %s33_s26, %s33_s26 }
   0x3   :  { %p699_p0 = scmp.ne.s32.totalorder %s33_s26, %s698_s27  ;;  %p704_p2 = scmp.lt.s32.totalorder %s698_s27, %s698_s27 }
   0x5   :  { %p705_p3 = por %p704_p2, %p703_p1 }
   0x7   :  { %p706_p4 = pnand %p705_p3, %p699_p0 }
   0x9   :  { %709 = shalt.err (!%p706_p4)
}
   0xa   :  { %s736_s28 = smov [#allocation2]  }
   0xb   :  { %35 = dma.vmem_to_smem %s33_s26, 16, %s736_s28, [#allocation4]  }
   0xc   :  { %732 = dma.done.wait [#allocation4], 16  }
   0xd   :  { %733 = vsyncadd [#allocation4], 4294967280 }
   0xe   :  { %39 = sfence }
   0xf   :  { %v56_v0 = vld [vmem:[%s928_s0] sm:$0xff]  ;;  %v57_v1 = vld [vmem:[%s928_s0 + $0x8] sm:$0xff]  ;;  %vm96_vm0 = vcmask 498688   ;;  %v58_v2 = vld [vmem:[%s928_s0 + $0x10] sm:$0xff]  ;;  %v737_v6 = vmov 0   ;;  %v738_v35 = vmov 0.0|0.0  }
  0x10   :  { %v618_v3 = vpack.c.bf16 %v57_v1, %v56_v0  ;;  %vm798_vm1 = vmpackc.low %vm96_vm0, %vm96_vm0  ;;  %v59_v5 = vld [vmem:[%s928_s0 + $0x18] sm:$0xff]  ;;  %680 = vset.pattern.permute.xlu0 %v737_v6  ;;  %681 = vset.pattern.permute.xlu1 %v737_v6  ;;  %v52_v8 = vld [vmem:[%s929_s1] sm:$0xff]  ;;  %vm739_vm2 = vmmov 0   ;;  %v740_v36 = vmov 0.0   ;;  %vm253_vm3 = vcmask 261120   ;;  %s40_s29 = sld [smem:[#allocation2]] }
  0x11   :  { %v624_v7 = vpack.c.bf16 %v59_v5, %v58_v2  ;;  %v60_v9 = vld [vmem:[%s928_s0 + $0x20] sm:$0xff]  ;;  %v61_v10 = vld [vmem:[%s928_s0 + $0x28] sm:$0xff]  ;;  %601 = vmatprep.mubr.msk.f32.mxu0 %vm96_vm0, %v52_v8  ;;  %v74_v12 = vld [vmem:[%s930_s2 + $0x10] sm:$0xff]  ;;  %666 = vmatprep.subr.bf16.mxu1 %v738_v35  ;;  %s512_s8 = sld [smem:[#allocation2 + $0x1]]  ;;  %s513_s9 = sld [smem:[#allocation2 + $0x2]] }
  0x12   :  { %620 = vmatprep.subr.msk.bf16.mxu0 %vm798_vm1, %v618_v3  ;;  %v72_v11 = vld [vmem:[%s930_s2] sm:$0xff]  ;;  %88 = vperm.xlu1 %681, %v74_v12   ;;  %v630_v13 = vpack.c.bf16 %v61_v10, %v60_v9  ;;  %v73_v14 = vld [vmem:[%s930_s2 + $0x8] sm:$0xff]  ;;  %v75_v15 = vld [vmem:[%s930_s2 + $0x18] sm:$0xff]  ;;  %s514_s2 = sld [smem:[#allocation2 + $0x3]]  ;;  %s517_s6 = sld [smem:[#allocation2 + $0x6]] }
  0x13   :  { %623 = vmatpush3.bf16.xpose.msk.msra.mxu0 %vm798_vm1, %v618_v3  ;;  %78 = vperm.xlu0 %680, %v72_v11   ;;  %v247_v16 = vld [vmem:[%s932_s4] sm:$0xff]  ;;  %v62_v17 = vld [vmem:[%s928_s0 + $0x30] sm:$0xff]  ;;  %v63_v18 = vld [vmem:[%s928_s0 + $0x38] sm:$0xff]  ;;  %s518_s4 = sld [smem:[#allocation2 + $0x7]]  ;;  %s516_s10 = sld [smem:[#allocation2 + $0x5]] }
  0x14   :  { %626 = vmatprep.subr.msk.bf16.mxu0 %vm798_vm1, %v624_v7  ;;  %v636_v19 = vpack.c.bf16 %v63_v18, %v62_v17  ;;  %v64_v20 = vld [vmem:[%s928_s0 + $0x40] sm:$0xff]  ;;  %v65_v21 = vld [vmem:[%s928_s0 + $0x48] sm:$0xff]  ;;  %v66_v23 = vld [vmem:[%s928_s0 + $0x50] sm:$0xff]  ;;  %615 = vmatprep.mubr.msk.f32.mxu1 %vm739_vm2, %v740_v36  ;;  %s519_s11 = sld [smem:[#allocation2 + $0x8]]  ;;  %s520_s12 = sld [smem:[#allocation2 + $0x9]] }
  0x15   :  { %v642_v22 = vpack.c.bf16 %v65_v21, %v64_v20  ;;  %v67_v24 = vld [vmem:[%s928_s0 + $0x58] sm:$0xff]  ;;  %v68_v26 = vld [vmem:[%s928_s0 + $0x60] sm:$0xff]  ;;  %v69_v27 = vld [vmem:[%s928_s0 + $0x68] sm:$0xff]  ;;  %s521_s13 = sld [smem:[#allocation2 + $0xa]]  ;;  %s522_s14 = sld [smem:[#allocation2 + $0xb]] }
  0x16   :  { %93 = vperm.xlu1 %681, %v75_v15   ;;  %v648_v25 = vpack.c.bf16 %v67_v24, %v66_v23  ;;  %v654_v28 = vpack.c.bf16 %v69_v27, %v68_v26  ;;  %v70_v29 = vld [vmem:[%s928_s0 + $0x70] sm:$0xff]  ;;  %v71_v30 = vld [vmem:[%s928_s0 + $0x78] sm:$0xff]  ;;  %v53_v32 = vld [vmem:[%s929_s1 + $0x8] sm:$0xff]  ;;  %s741_s15 = smov [#allocation5]  }
  0x17   :  { %83 = vperm.xlu0 %680, %v73_v14   ;;  %v660_v31 = vpack.c.bf16 %v71_v30, %v70_v29  ;;  %v54_v33 = vld [vmem:[%s929_s1 + $0x10] sm:$0xff]  ;;  %v55_v34 = vld [vmem:[%s929_s1 + $0x18] sm:$0xff]  ;;  %v246_v55 = vld [vmem:[%s931_s3] sm:$0xff]  ;;  %v351_v14 = vstv %s40_s29  ;;  %s500_s16 = sshll.u32 %s741_s15, 4  ;;  %s501_s16 = int_to_ptr.vmem [resolvable:$true] %s500_s16 }
  0x18   :  { %v327_v4 = vld [vmem:[%s933_s5] sm:$0xf]  ;;  %v357_v15 = vstv %s512_s8  ;;  %v395_v17 = vstv %s514_s2  ;;  %s515_s5 = sld [smem:[#allocation2 + $0x4]]  ;;  %s710_s17 = scalar_lea.vmem %s501_s16, 256 }
  0x19   :  { %v910_v9 = vrot.slane %v327_v4, 4  ;;  %v445_v20 = vstv %s518_s4  ;;  %p711_p5 = scmp.ne.s32.totalorder %s501_s16, %s710_s17  ;;  %p715_p6 = scmp.lt.s32.totalorder %s501_s16, %s501_s16 }
  0x1a   :  { %p716_p7 = scmp.lt.s32.totalorder %s710_s17, %s710_s17 }
  0x1b   :  { %629 = vmatpush3.bf16.xpose.msk.msra.mxu0 %vm798_vm1, %v624_v7  ;;  %250 = vperm.xlu0 %680, %v247_v16   ;;  %v383_v16 = vstv %s513_s9 }
  0x1c   :  { %632 = vmatprep.subr.msk.bf16.mxu0 %vm798_vm1, %v630_v13  ;;  %p717_p8 = por %p716_p7, %p715_p6 }
  0x1e   :  { %p718_p9 = pnand %p717_p8, %p711_p5 }
  0x23   :  { %635 = vmatpush3.bf16.xpose.msk.msra.mxu0 %vm798_vm1, %v630_v13 }
  0x24   :  { %638 = vmatprep.subr.msk.bf16.mxu0 %vm798_vm1, %v636_v19 }
  0x2b   :  { %641 = vmatpush3.bf16.xpose.msk.msra.mxu0 %vm798_vm1, %v636_v19  ;;  %v427_v19 = vstv %s517_s6 }
  0x2c   :  { %644 = vmatprep.subr.msk.bf16.mxu0 %vm798_vm1, %v642_v22 }
  0x33   :  { %647 = vmatpush3.bf16.xpose.msk.msra.mxu0 %vm798_vm1, %v642_v22 }
  0x34   :  { %650 = vmatprep.subr.msk.bf16.mxu0 %vm798_vm1, %v648_v25 }
  0x3b   :  { %653 = vmatpush3.bf16.xpose.msk.msra.mxu0 %vm798_vm1, %v648_v25 }
  0x3c   :  { %656 = vmatprep.subr.msk.bf16.mxu0 %vm798_vm1, %v654_v28 }
  0x43   :  { %659 = vmatpush3.bf16.xpose.msk.msra.mxu0 %vm798_vm1, %v654_v28 }
  0x44   :  { %662 = vmatprep.subr.msk.bf16.mxu0 %vm798_vm1, %v660_v31 }
  0x4b   :  { %665 = vmatpush3.bf16.xpose.msk.msra.mxu0 %vm798_vm1, %v660_v31 }
  0x52   :  { %602 = vmatmul.mubr.msk.f32.vlgmr.msra.gmra.mrb[0].mxu0 %vm96_vm0, %v53_v32 }
  0x53   :  { %604 = vmatprep.mubr.msk.f32.mxu0 %vm96_vm0, %v54_v33 }
  0x56   :  { %605 = vmatmul.mubr.msk.f32.gmra.mrb[2].mxu0 %vm96_vm0, %v55_v34 }
  0x91   :  { %v89_v38 = vpop.permute.xlu1 %88 }
  0x92   :  { %v79_v37 = vpop.permute.xlu0 %78 }
  0x95   :  { %v94_v45 = vpop.permute.xlu1 %93 }
  0x96   :  { %v84_v39 = vpop.permute.xlu0 %83 }
  0x9a   :  { %v251_v56 = vpop.permute.xlu0 %250 }
 0x125   :  { %v603_v40 = vpop.f32.mrb[0].mxu0 }
 0x126   :  { %v229_v41 = vadd.f32 %v603_v40, %v84_v39  ;;  %v223_v42 = vpop.f32.mrb[1].mxu0 }
 0x127   :  { %v224_v43 = vadd.f32 %v223_v42, %v79_v37 }
 0x128   :  { %v243_v44 = vmax.f32 %v229_v41, 0.0 }
 0x129   :  { %v242_v46 = vmax.f32 %v224_v43, 0.0  ;;  %v606_v47 = vpop.f32.mrb[2].mxu0 }
 0x12a   :  { %v239_v48 = vadd.f32 %v606_v47, %v94_v45  ;;  %v233_v49 = vpop.f32.mrb[3].mxu0 }
 0x12b   :  { %v234_v50 = vadd.f32 %v233_v49, %v89_v38  ;;  %v667_v51 = vpack.c.bf16 %v243_v44, %v242_v46 }
 0x12c   :  { %v245_v52 = vmax.f32 %v239_v48, 0.0 }
 0x12d   :  { %v244_v53 = vmax.f32 %v234_v50, 0.0  ;;  %668 = vmatpush3.bf16.msra.mxu1 %v667_v51 }
 0x12e   :  { %669 = vmatprep.subr.bf16.mxu1 %v738_v35 }
 0x12f   :  { %v670_v54 = vpack.c.bf16 %v245_v52, %v244_v53 }
 0x131   :  { %671 = vmatpush3.bf16.msra.mxu1 %v670_v54 }
 0x134   :  { %616 = vmatmul.mubr.msk.f32.vlgmr.msra.gmra.mrb[0].mxu1 %vm253_vm3, %v246_v55  ;;  %v389_v55 = vstv %s515_s5 }
 0x207   :  { %v323_v57 = vpop.f32.mrb[0].mxu1 }
 0x208   :  { %v324_v58 = vadd.f32 %v323_v57, %v251_v56  ;;  %v617_v59 = vpop.f32.mrb[1].mxu1  ;;  %v401_v56 = vstv %s516_s10  ;;  %v433_v57 = vstv %s519_s11 }
 0x20a   :  { %v329_v60 = vand.u32 2147483647, %v324_v58  ;;  %483 = vst [vmem:[#allocation5] sm:$0x1] %v324_v58  ;;  %v328_v8 = vmax.f32 %v324_v58, 0.0 }
 0x20c   :  { %v330_v61 = vsub.f32 0.0, %v329_v60 }
 0x20e   :  { %v331_v62 = vmul.f32 1.442695, %v330_v61 }
 0x210   :  { %682 = vpow2.f32 %v331_v62 }
 0x21a   :  { %v683_v63 = vpop.eup %682 }
 0x21b   :  { %v333_v0 = vadd.f32 1.0, %v683_v63  ;;  %v336_v1 = vmul.f32 -0.5, %v683_v63  ;;  %v339_v3 = vand.u32 2147483647, %v683_v63 }
 0x21d   :  { %684 = vlog2.f32 %v333_v0  ;;  %v337_v2 = vadd.f32 1.0, %v336_v1  ;;  %vm340_vm4 = vcmp.lt.f32.partialorder %v339_v3, 0.0004427343 }
 0x21f   :  { %v338_v7 = vmul.f32 %v683_v63, %v337_v2 }
 0x227   :  { %v685_v5 = vpop.eup %684 }
 0x228   :  { %v335_v6 = vmul.f32 0.6931472, %v685_v5 }
 0x22a   :  { %v341_v10 = vsel %vm340_vm4, %v338_v7, %v335_v6 }
 0x22b   :  { %v342_v11 = vadd.f32 %v341_v10, %v328_v8 }
 0x22d   :  { %v346_v12 = vmul.f32 %v910_v9, %v342_v11  ;;  %487 = vst [vmem:[#allocation5] sm:$0x10] %v342_v11 }
 0x22f   :  { %v348_v13 = vrot.slane %v346_v12, 4 }
 0x231   :  { %v350_v18 = vadd.f32 %v348_v13, %v324_v58 }
 0x233   :  { %v352_v21 = vmul.f32 %v351_v14, %v350_v18  ;;  %v358_v22 = vmul.f32 %v357_v15, %v350_v18  ;;  %v384_v23 = vmul.f32 %v383_v16, %v350_v18  ;;  %v396_v24 = vmul.f32 %v395_v17, %v350_v18  ;;  %491 = vst [vmem:[#allocation5 + $0x8] sm:$0x1] %v350_v18 }
 0x234   :  { %v428_v25 = vmul.f32 %v427_v19, %v350_v18  ;;  %v446_v26 = vmul.f32 %v445_v20, %v350_v18 }
 0x235   :  { %v354_v27 = vrot.slane %v352_v21, 7  ;;  %v360_v28 = vrot.slane %v358_v22, 3  ;;  %v386_v29 = vrot.slane %v384_v23, 6  ;;  %v398_v30 = vrot.slane %v396_v24, 2 }
 0x236   :  { %v430_v31 = vrot.slane %v428_v25, 5  ;;  %v448_v32 = vrot.slane %v446_v26, 1  ;;  %v439_v25 = vstv %s521_s13  ;;  %v457_v26 = vstv %s522_s14 }
 0x237   :  { %v356_v33 = vadd.f32 %v354_v27, %v324_v58  ;;  %v362_v34 = vadd.f32 %v360_v28, %v324_v58  ;;  %v388_v35 = vadd.f32 %v386_v29, %v324_v58  ;;  %v400_v36 = vadd.f32 %v398_v30, %v324_v58 }
 0x238   :  { %v432_v37 = vadd.f32 %v430_v31, %v324_v58  ;;  %v450_v38 = vadd.f32 %v448_v32, %v324_v58  ;;  %v451_v58 = vstv %s520_s12 }
 0x239   :  { %v364_v39 = vand.u32 2147483647, %v362_v34  ;;  %484 = vst [vmem:[#allocation5] sm:$0x2] %v356_v33  ;;  %v363_v50 = vmax.f32 %v362_v34, 0.0 }
 0x23b   :  { %v365_v40 = vsub.f32 0.0, %v364_v39 }
 0x23d   :  { %v366_v41 = vmul.f32 1.442695, %v365_v40 }
 0x23f   :  { %686 = vpow2.f32 %v366_v41 }
 0x249   :  { %v687_v42 = vpop.eup %686 }
 0x24a   :  { %v368_v43 = vadd.f32 1.0, %v687_v42  ;;  %v371_v44 = vmul.f32 -0.5, %v687_v42  ;;  %v374_v46 = vand.u32 2147483647, %v687_v42 }
 0x24c   :  { %688 = vlog2.f32 %v368_v43  ;;  %v372_v45 = vadd.f32 1.0, %v371_v44  ;;  %vm375_vm5 = vcmp.lt.f32.partialorder %v374_v46, 0.0004427343 }
 0x24e   :  { %v373_v49 = vmul.f32 %v687_v42, %v372_v45 }
 0x256   :  { %v689_v47 = vpop.eup %688 }
 0x257   :  { %v370_v48 = vmul.f32 0.6931472, %v689_v47 }
 0x259   :  { %v376_v51 = vsel %vm375_vm5, %v373_v49, %v370_v48 }
 0x25a   :  { %v377_v52 = vadd.f32 %v376_v51, %v363_v50 }
 0x25c   :  { %v378_v53 = vmul.f32 %v377_v52, %v910_v9  ;;  %488 = vst [vmem:[#allocation5] sm:$0x20] %v377_v52 }
 0x25e   :  { %v380_v54 = vrot.slane %v378_v53, 4 }
 0x260   :  { %v382_v59 = vadd.f32 %v380_v54, %v356_v33 }
 0x262   :  { %v390_v60 = vmul.f32 %v389_v55, %v382_v59  ;;  %v402_v61 = vmul.f32 %v401_v56, %v382_v59  ;;  %v434_v62 = vmul.f32 %v433_v57, %v382_v59  ;;  %v452_v63 = vmul.f32 %v451_v58, %v382_v59  ;;  %492 = vst [vmem:[#allocation5 + $0x8] sm:$0x2] %v382_v59 }
 0x264   :  { %v392_v0 = vrot.slane %v390_v60, 7  ;;  %v404_v1 = vrot.slane %v402_v61, 3  ;;  %v436_v2 = vrot.slane %v434_v62, 6  ;;  %v454_v3 = vrot.slane %v452_v63, 2 }
 0x266   :  { %v394_v4 = vadd.f32 %v392_v0, %v388_v35  ;;  %v406_v5 = vadd.f32 %v404_v1, %v400_v36  ;;  %v438_v6 = vadd.f32 %v436_v2, %v432_v37  ;;  %v456_v7 = vadd.f32 %v454_v3, %v450_v38 }
 0x268   :  { %v408_v8 = vand.u32 2147483647, %v406_v5  ;;  %485 = vst [vmem:[#allocation5] sm:$0x4] %v394_v4  ;;  %v407_v20 = vmax.f32 %v406_v5, 0.0 }
 0x26a   :  { %v409_v10 = vsub.f32 0.0, %v408_v8 }
 0x26c   :  { %v410_v11 = vmul.f32 1.442695, %v409_v10 }
 0x26e   :  { %690 = vpow2.f32 %v410_v11 }
 0x278   :  { %v691_v12 = vpop.eup %690 }
 0x279   :  { %v412_v13 = vadd.f32 1.0, %v691_v12  ;;  %v415_v14 = vmul.f32 -0.5, %v691_v12  ;;  %v418_v16 = vand.u32 2147483647, %v691_v12 }
 0x27b   :  { %692 = vlog2.f32 %v412_v13  ;;  %v416_v15 = vadd.f32 1.0, %v415_v14  ;;  %vm419_vm6 = vcmp.lt.f32.partialorder %v418_v16, 0.0004427343 }
 0x27d   :  { %v417_v19 = vmul.f32 %v691_v12, %v416_v15 }
 0x285   :  { %v693_v17 = vpop.eup %692 }
 0x286   :  { %v414_v18 = vmul.f32 0.6931472, %v693_v17 }
 0x288   :  { %v420_v21 = vsel %vm419_vm6, %v417_v19, %v414_v18 }
 0x289   :  { %v421_v22 = vadd.f32 %v420_v21, %v407_v20 }
 0x28b   :  { %v422_v23 = vmul.f32 %v421_v22, %v910_v9  ;;  %489 = vst [vmem:[#allocation5] sm:$0x40] %v421_v22 }
 0x28d   :  { %v424_v24 = vrot.slane %v422_v23, 4 }
 0x28f   :  { %v426_v27 = vadd.f32 %v424_v24, %v394_v4 }
 0x291   :  { %v440_v28 = vmul.f32 %v439_v25, %v426_v27  ;;  %v458_v29 = vmul.f32 %v457_v26, %v426_v27  ;;  %493 = vst [vmem:[#allocation5 + $0x8] sm:$0x4] %v426_v27 }
 0x293   :  { %v442_v30 = vrot.slane %v440_v28, 7  ;;  %v460_v31 = vrot.slane %v458_v29, 3 }
 0x295   :  { %v444_v32 = vadd.f32 %v442_v30, %v438_v6  ;;  %v462_v33 = vadd.f32 %v460_v31, %v456_v7 }
 0x297   :  { %v464_v34 = vand.u32 2147483647, %v462_v33  ;;  %486 = vst [vmem:[#allocation5] sm:$0x8] %v444_v32  ;;  %v463_v45 = vmax.f32 %v462_v33, 0.0 }
 0x299   :  { %v465_v35 = vsub.f32 0.0, %v464_v34 }
 0x29b   :  { %v466_v36 = vmul.f32 1.442695, %v465_v35 }
 0x29d   :  { %694 = vpow2.f32 %v466_v36 }
 0x2a7   :  { %v695_v37 = vpop.eup %694 }
 0x2a8   :  { %v468_v38 = vadd.f32 1.0, %v695_v37  ;;  %v471_v39 = vmul.f32 -0.5, %v695_v37  ;;  %v474_v41 = vand.u32 2147483647, %v695_v37 }
 0x2aa   :  { %696 = vlog2.f32 %v468_v38  ;;  %v472_v40 = vadd.f32 1.0, %v471_v39  ;;  %vm475_vm7 = vcmp.lt.f32.partialorder %v474_v41, 0.0004427343 }
 0x2ac   :  { %v473_v44 = vmul.f32 %v695_v37, %v472_v40 }
 0x2b4   :  { %v697_v42 = vpop.eup %696 }
 0x2b5   :  { %v470_v43 = vmul.f32 0.6931472, %v697_v42 }
 0x2b7   :  { %v476_v46 = vsel %vm475_vm7, %v473_v44, %v470_v43 }
 0x2b8   :  { %v477_v47 = vadd.f32 %v476_v46, %v463_v45 }
 0x2ba   :  { %v478_v48 = vmul.f32 %v477_v47, %v910_v9  ;;  %490 = vst [vmem:[#allocation5] sm:$0x80] %v477_v47 }
 0x2bc   :  { %v480_v49 = vrot.slane %v478_v48, 4 }
 0x2be   :  { %v482_v50 = vadd.f32 %v480_v49, %v444_v32 }
 0x2c0   :  { %494 = vst [vmem:[#allocation5 + $0x8] sm:$0x8] %v482_v50 }
 0x2c1   :  { %721 = shalt.err (!%p718_p9)
}
 0x2c2   :  { %s722_s20 = scalar_lea.hbm %s935_s7, 256 }
 0x2c3   :  { %p723_p10 = scmp.ne.s32.totalorder %s935_s7, %s722_s20  ;;  %p726_p11 = scmp.lt.u32.totalorder %s722_s20, %s935_s7 }
 0x2c5   :  { %p728_p12 = pnand %p726_p11, %p723_p10 }
 0x2c7   :  { %731 = shalt.err (!%p728_p12)
}
 0x2c8   :  { %s742_s25 = smov 128   ;;  %s743_s26 = smov 8  }
 0x2c9   :  { %506 = dma.vmem_to_hbm [thread:$0]  %s501_s16, 256, %s935_s7, [#allocation3], %s742_s25, %s742_s25, %s743_s26  }
 0x2ca   :  { %734 = dma.done.wait [#allocation3], 256  }
 0x2cb   :  { %735 = vsyncadd [#allocation3], 4294967040 }
 0x2cc   :  { %510 = vsyncpa [#allocation3], 1 }
 0x2cd   :  { %511 = vsyncpa [#allocation4], 1 }

</bundles_post_ra>
